<compile_context>
chip_gen: v7x
topology: tpu7x:2x2x1
jax: 0.10.0
libtpu: 0.0.40
codegen_flags: <defaults>
</compile_context>

<pallas_src>
import functools

import jax
import jax.numpy as jnp
from jax import lax
from jax.experimental import pallas as pl
from jax.experimental.pallas import tpu as pltpu


_VMEM_LIMIT_BYTES = 32 * 1024 * 1024  # safe headroom on v5e/v6e (128 MiB) and v7x (64 MiB)


def _pick_tile(n, cap):
    """Largest tile <= cap that divides n and is sublane-aligned (or n itself)."""
    for t in range(min(cap, n), 0, -1):
        if n % t == 0 and (t % 8 == 0 or t == n):
            return t
    return n


# --------------------------------------------------------------------------
# Kernel 1: per-head QKV projection, x (B, N, C) -> q, k, v (B, H, N, hd).
# --------------------------------------------------------------------------
def _qkv_head_split_kernel(x_ref, wq_ref, wk_ref, wv_ref, bq_ref, bv_ref,
                           q_ref, k_ref, v_ref):
    x = x_ref[0]                                                   # (TN, C)
    # Scale is already folded into wq / bq; k has no bias in the module.
    q_ref[0, 0] = (jnp.dot(x, wq_ref[0], preferred_element_type=jnp.float32)
                   + bq_ref[0]).astype(q_ref.dtype)
    k_ref[0, 0] = jnp.dot(x, wk_ref[0],
                          preferred_element_type=jnp.float32).astype(k_ref.dtype)
    v_ref[0, 0] = (jnp.dot(x, wv_ref[0], preferred_element_type=jnp.float32)
                   + bv_ref[0]).astype(v_ref.dtype)


# --------------------------------------------------------------------------
# Kernel 2: flash attention (online softmax over KV tiles) fused with the
# output projection; grid = (B, q_tiles, H, kv_tiles).
# --------------------------------------------------------------------------
def _flash_attn_proj_kernel(q_ref, k_ref, v_ref, wp_ref, bp_ref, o_ref,
                            m_sc, l_sc, acc_sc, out_sc, *, num_heads):
    h = pl.program_id(2)
    kv = pl.program_id(3)
    nkv = pl.num_programs(3)

    @pl.when(jnp.logical_and(h == 0, kv == 0))
    def _():
        out_sc[...] = jnp.zeros_like(out_sc)            # (TQ, C) f32 accumulator

    @pl.when(kv == 0)
    def _():
        m_sc[...] = jnp.full_like(m_sc, -jnp.inf)
        l_sc[...] = jnp.zeros_like(l_sc)
        acc_sc[...] = jnp.zeros_like(acc_sc)

    q = q_ref[0, 0]                                      # (TQ, hd), scale pre-folded
    k = k_ref[0, 0]                                      # (TK, hd)
    v = v_ref[0, 0]                                      # (TK, hd)

    # q @ k^T without an explicit transpose: contract dim 1 of both operands.
    s = lax.dot_general(q, k, dimension_numbers=(((1,), (1,)), ((), ())),
                        preferred_element_type=jnp.float32)        # (TQ, TK)

    m_prev = m_sc[...]
    m_new = jnp.maximum(m_prev, jnp.max(s, axis=-1, keepdims=True))
    alpha = jnp.exp(m_prev - m_new)
    p = jnp.exp(s - m_new)
    l_sc[...] = alpha * l_sc[...] + jnp.sum(p, axis=-1, keepdims=True)
    acc_sc[...] = alpha * acc_sc[...] + jnp.dot(
        p.astype(v.dtype), v, preferred_element_type=jnp.float32)
    m_sc[...] = m_new

    @pl.when(kv == nkv - 1)
    def _():
        # Normalize this head's context with an EUP reciprocal, project it
        # with the head's (hd, C) proj slice and accumulate (no concatenate).
        ctx = acc_sc[...] * pl.reciprocal(l_sc[...], approx=True)   # (TQ, hd) f32
        out_sc[...] += jnp.dot(ctx.astype(wp_ref.dtype), wp_ref[0],
                               preferred_element_type=jnp.float32)

    @pl.when(jnp.logical_and(h == num_heads - 1, kv == nkv - 1))
    def _():
        o_ref[0] = (out_sc[...] + bp_ref[...]).astype(o_ref.dtype)


# --------------------------------------------------------------------------
# Wrapper: takes weights in the PyTorch module's native layout.
# --------------------------------------------------------------------------
def attention_forward(x, wqkv, q_bias, v_bias, wproj, bproj, *, num_heads,
                      qk_scale=None, compute_dtype=jnp.bfloat16,
                      n_tile=512, q_tile=256, kv_tile=512):
    """VideoMAEv2 Attention forward.

    x:      (B, N, C)
    wqkv:   (3*D, C)   = nn.Linear(dim, all_head_dim*3, bias=False).weight
    q_bias: (D,)       v_bias: (D,)     (k bias is identically zero)
    wproj:  (C, D)     = nn.Linear(all_head_dim, dim).weight
    bproj:  (C,)
    """
    B, N, C = x.shape
    three_d = wqkv.shape[0]
    D = three_d // 3
    hd = D // num_heads
    scale = qk_scale if qk_scale is not None else hd ** (-0.5)
    cdt = compute_dtype if compute_dtype is not None else x.dtype
    out_dtype = x.dtype

    # ---- one-time weight prep: layout + scale folding (bias add happens
    #      after scaling in the module, so fold scale into both wq and bq) ----
    w3 = wqkv.reshape(3, num_heads, hd, C)                        # (3, H, hd, C)
    wq = jnp.transpose(w3[0] * scale, (0, 2, 1)).astype(cdt)      # (H, C, hd)
    wk = jnp.transpose(w3[1], (0, 2, 1)).astype(cdt)              # (H, C, hd)
    wv = jnp.transpose(w3[2], (0, 2, 1)).astype(cdt)              # (H, C, hd)
    bq = (q_bias * scale).reshape(num_heads, 1, hd).astype(jnp.float32)
    bv = v_bias.reshape(num_heads, 1, hd).astype(jnp.float32)
    wp = jnp.transpose(wproj).reshape(num_heads, hd, C).astype(cdt)  # (H, hd, C)
    bp = bproj.reshape(1, C).astype(jnp.float32)
    xc = x.astype(cdt)

    tn = _pick_tile(N, n_tile)
    tq = _pick_tile(N, q_tile)   # q_tile=256 also fits v7x's 64 MiB comfortably
    tk = _pick_tile(N, kv_tile)

    # ---------------- Kernel 1: QKV projection + head split ----------------
    q, k, v = pl.pallas_call(
        _qkv_head_split_kernel,
        out_shape=tuple(jax.ShapeDtypeStruct((B, num_heads, N, hd), cdt)
                        for _ in range(3)),
        grid_spec=pltpu.PrefetchScalarGridSpec(
            num_scalar_prefetch=0,
            grid=(B, N // tn, num_heads),
            in_specs=[
                pl.BlockSpec((1, tn, C), lambda b, n, h: (b, n, 0)),
                pl.BlockSpec((1, C, hd), lambda b, n, h: (h, 0, 0)),
                pl.BlockSpec((1, C, hd), lambda b, n, h: (h, 0, 0)),
                pl.BlockSpec((1, C, hd), lambda b, n, h: (h, 0, 0)),
                pl.BlockSpec((1, 1, hd), lambda b, n, h: (h, 0, 0)),
                pl.BlockSpec((1, 1, hd), lambda b, n, h: (h, 0, 0)),
            ],
            out_specs=[
                pl.BlockSpec((1, 1, tn, hd), lambda b, n, h: (b, h, n, 0)),
                pl.BlockSpec((1, 1, tn, hd), lambda b, n, h: (b, h, n, 0)),
                pl.BlockSpec((1, 1, tn, hd), lambda b, n, h: (b, h, n, 0)),
            ],
        ),
        compiler_params=pltpu.CompilerParams(
            dimension_semantics=("parallel", "parallel", "arbitrary"),
            vmem_limit_bytes=_VMEM_LIMIT_BYTES),
    )(xc, wq, wk, wv, bq, bv)

    # ------------- Kernel 2: flash attention + output projection -----------
    kernel2 = functools.partial(_flash_attn_proj_kernel, num_heads=num_heads)
    out = pl.pallas_call(
        kernel2,
        out_shape=jax.ShapeDtypeStruct((B, N, C), out_dtype),
        grid_spec=pltpu.PrefetchScalarGridSpec(
            num_scalar_prefetch=0,
            grid=(B, N // tq, num_heads, N // tk),
            in_specs=[
                pl.BlockSpec((1, 1, tq, hd), lambda b, qi, h, kv: (b, h, qi, 0)),
                pl.BlockSpec((1, 1, tk, hd), lambda b, qi, h, kv: (b, h, kv, 0)),
                pl.BlockSpec((1, 1, tk, hd), lambda b, qi, h, kv: (b, h, kv, 0)),
                pl.BlockSpec((1, hd, C), lambda b, qi, h, kv: (h, 0, 0)),
                pl.BlockSpec((1, C), lambda b, qi, h, kv: (0, 0)),
            ],
            out_specs=pl.BlockSpec((1, tq, C), lambda b, qi, h, kv: (b, qi, 0)),
            scratch_shapes=[
                pltpu.VMEM((tq, 1), jnp.float32),    # running max m
                pltpu.VMEM((tq, 1), jnp.float32),    # running denom l
                pltpu.VMEM((tq, hd), jnp.float32),   # per-head context accumulator
                pltpu.VMEM((tq, C), jnp.float32),    # projected output accumulator
            ],
        ),
        compiler_params=pltpu.CompilerParams(
            dimension_semantics=("parallel", "parallel", "arbitrary", "arbitrary"),
            vmem_limit_bytes=_VMEM_LIMIT_BYTES),
    )(q, k, v, wp, bp)
    return out


# --------------------------------------------------------------------------
# Pure-JAX reference mirroring the PyTorch forward (non-fused path).
# --------------------------------------------------------------------------
def attention_reference(x, wqkv, q_bias, v_bias, wproj, bproj, *, num_heads,
                        qk_scale=None):
    B, N, C = x.shape
    D = wqkv.shape[0] // 3
    hd = D // num_heads
    scale = qk_scale if qk_scale is not None else hd ** (-0.5)

    bias = jnp.concatenate([q_bias, jnp.zeros_like(q_bias), v_bias])
    qkv = x @ wqkv.T + bias                                        # (B, N, 3D)
    qkv = qkv.reshape(B, N, 3, num_heads, hd).transpose(2, 0, 3, 1, 4)
    q, k, v = qkv[0], qkv[1], qkv[2]                               # (B, H, N, hd)
    attn = (q * scale) @ jnp.swapaxes(k, -2, -1)                   # (B, H, N, N)
    attn = jax.nn.softmax(attn, axis=-1)
    out = attn @ v                                                 # (B, H, N, hd)
    out = jnp.swapaxes(out, 1, 2).reshape(B, N, D)
    return out @ wproj.T + bproj


if __name__ == "__main__":
    # Small shapes consistent with the module's forward: (B, N, C).
    B, N, C = 2, 8, 32
    num_heads = 4
    head_dim = C // num_heads
    all_head_dim = head_dim * num_heads   # == C

    key = jax.random.PRNGKey(0)
    kx, kw1, kbq, kbv, kw2, kb2 = jax.random.split(key, 6)

    x = jax.random.normal(kx, (B, N, C), dtype=jnp.float32)
    # nn.Linear(dim, all_head_dim*3, bias=False).weight: (3D, C)
    wqkv = 0.02 * jax.random.normal(kw1, (3 * all_head_dim, C), dtype=jnp.float32)
    # qkv_bias=True path: bias = cat(q_bias, zeros, v_bias)
    q_bias = 0.01 * jax.random.normal(kbq, (all_head_dim,), dtype=jnp.float32)
    v_bias = 0.01 * jax.random.normal(kbv, (all_head_dim,), dtype=jnp.float32)
    # nn.Linear(all_head_dim, dim): weight (C, D) + bias (C,)
    wproj = 0.02 * jax.random.normal(kw2, (C, all_head_dim), dtype=jnp.float32)
    bproj = 0.01 * jax.random.normal(kb2, (C,), dtype=jnp.float32)

    ref = attention_reference(x, wqkv, q_bias, v_bias, wproj, bproj,
                              num_heads=num_heads)

    # float32 compute path (tight check; only approx-reciprocal + accumulation
    # order differ from the reference).
    out_f32 = attention_forward(x, wqkv, q_bias, v_bias, wproj, bproj,
                                num_heads=num_heads,
                                compute_dtype=jnp.float32)
    out_f32 = jax.block_until_ready(out_f32)
    assert out_f32.shape == (B, N, C)
    assert jnp.allclose(out_f32, ref, atol=2e-3, rtol=2e-3), "f32 mismatch vs reference"

    # bfloat16 MXU path (production default; looser tolerance for bf16 rounding).
    out_bf16 = attention_forward(x, wqkv, q_bias, v_bias, wproj, bproj,
                                 num_heads=num_heads,
                                 compute_dtype=jnp.bfloat16)
    out_bf16 = jax.block_until_ready(out_bf16)
    assert out_bf16.shape == (B, N, C)
    assert jnp.allclose(out_bf16, ref, atol=3e-2, rtol=3e-2), "bf16 mismatch vs reference"

    print("KERNEL_OK")
</pallas_src>

<mosaic_0001>
module attributes {stable_mosaic.version = 11 : i64} {
  func.func @_qkv_head_split_kernel(%arg0: i32, %arg1: i32, %arg2: i32, %arg3: memref<1x8x32xf32, #tpu.memory_space<vmem>>, %arg4: memref<1x32x8xf32, #tpu.memory_space<vmem>>, %arg5: memref<1x32x8xf32, #tpu.memory_space<vmem>>, %arg6: memref<1x32x8xf32, #tpu.memory_space<vmem>>, %arg7: memref<1x1x8xf32, #tpu.memory_space<vmem>>, %arg8: memref<1x1x8xf32, #tpu.memory_space<vmem>>, %arg9: memref<1x1x8x8xf32, #tpu.memory_space<vmem>>, %arg10: memref<1x1x8x8xf32, #tpu.memory_space<vmem>>, %arg11: memref<1x1x8x8xf32, #tpu.memory_space<vmem>>) attributes {dimension_semantics = [#tpu.dimension_semantics<parallel>, #tpu.dimension_semantics<parallel>, #tpu.dimension_semantics<arbitrary>], iteration_bounds = array<i64: 2, 1, 4>, scalar_prefetch = 0 : i64, scratch_operands = 0 : i64, tpu.core_type = #tpu.core_type<tc>, window_params = [{transform_indices = @transform_0, window_bounds = array<i64: 1, 8, 32>}, {transform_indices = @transform_1, window_bounds = array<i64: 1, 32, 8>}, {transform_indices = @transform_2, window_bounds = array<i64: 1, 32, 8>}, {transform_indices = @transform_3, window_bounds = array<i64: 1, 32, 8>}, {transform_indices = @transform_4, window_bounds = array<i64: 1, 1, 8>}, {transform_indices = @transform_5, window_bounds = array<i64: 1, 1, 8>}, {transform_indices = @transform_6, window_bounds = array<i64: 1, 1, 8, 8>}, {transform_indices = @transform_7, window_bounds = array<i64: 1, 1, 8, 8>}, {transform_indices = @transform_8, window_bounds = array<i64: 1, 1, 8, 8>}]} {
    %c0 = arith.constant 0 : index
    %c0_0 = arith.constant 0 : index
    %c0_1 = arith.constant 0 : index
    %0 = vector.load %arg3[%c0, %c0_0, %c0_1] : memref<1x8x32xf32, #tpu.memory_space<vmem>>, vector<1x8x32xf32>
    %1 = vector.shape_cast %0 : vector<1x8x32xf32> to vector<8x32xf32>
    %c0_2 = arith.constant 0 : index
    %c0_3 = arith.constant 0 : index
    %c0_4 = arith.constant 0 : index
    %2 = vector.load %arg4[%c0_2, %c0_3, %c0_4] : memref<1x32x8xf32, #tpu.memory_space<vmem>>, vector<1x32x8xf32>
    %3 = vector.shape_cast %2 : vector<1x32x8xf32> to vector<32x8xf32>
    %cst = arith.constant dense<0.000000e+00> : vector<8x8xf32>
    %4 = tpu.matmul %1, %3, %cst {dimension_numbers = #tpu.dot_dimension_numbers<[1], [0], [0], [1], [0, 0, 1, 1], [], []>} : vector<8x32xf32>, vector<32x8xf32>, vector<8x8xf32> -> vector<8x8xf32>
    %c0_5 = arith.constant 0 : index
    %c0_6 = arith.constant 0 : index
    %c0_7 = arith.constant 0 : index
    %5 = vector.load %arg7[%c0_5, %c0_6, %c0_7] : memref<1x1x8xf32, #tpu.memory_space<vmem>>, vector<1x1x8xf32>
    %6 = vector.shape_cast %5 : vector<1x1x8xf32> to vector<1x8xf32>
    %7 = vector.broadcast %6 : vector<1x8xf32> to vector<8x8xf32>
    %8 = arith.addf %4, %7 : vector<8x8xf32>
    %c0_8 = arith.constant 0 : index
    %c0_9 = arith.constant 0 : index
    %c0_10 = arith.constant 0 : index
    %c0_11 = arith.constant 0 : index
    %9 = vector.load %arg9[%c0_8, %c0_9, %c0_10, %c0_11] : memref<1x1x8x8xf32, #tpu.memory_space<vmem>>, vector<1x1x8x8xf32>
    %10 = vector.shape_cast %9 : vector<1x1x8x8xf32> to vector<8x8xf32>
    %11 = vector.shape_cast %8 : vector<8x8xf32> to vector<1x1x8x8xf32>
    tpu.vector_store %arg9[%c0_8, %c0_9, %c0_10, %c0_11], %11 {strides = array<i32>} : memref<1x1x8x8xf32, #tpu.memory_space<vmem>>, vector<1x1x8x8xf32>,
    %c0_12 = arith.constant 0 : index
    %c0_13 = arith.constant 0 : index
    %c0_14 = arith.constant 0 : index
    %12 = vector.load %arg5[%c0_12, %c0_13, %c0_14] : memref<1x32x8xf32, #tpu.memory_space<vmem>>, vector<1x32x8xf32>
    %13 = vector.shape_cast %12 : vector<1x32x8xf32> to vector<32x8xf32>
    %cst_15 = arith.constant dense<0.000000e+00> : vector<8x8xf32>
    %14 = tpu.matmul %1, %13, %cst_15 {dimension_numbers = #tpu.dot_dimension_numbers<[1], [0], [0], [1], [0, 0, 1, 1], [], []>} : vector<8x32xf32>, vector<32x8xf32>, vector<8x8xf32> -> vector<8x8xf32>
    %c0_16 = arith.constant 0 : index
    %c0_17 = arith.constant 0 : index
    %c0_18 = arith.constant 0 : index
    %c0_19 = arith.constant 0 : index
    %15 = vector.load %arg10[%c0_16, %c0_17, %c0_18, %c0_19] : memref<1x1x8x8xf32, #tpu.memory_space<vmem>>, vector<1x1x8x8xf32>
    %16 = vector.shape_cast %15 : vector<1x1x8x8xf32> to vector<8x8xf32>
    %17 = vector.shape_cast %14 : vector<8x8xf32> to vector<1x1x8x8xf32>
    tpu.vector_store %arg10[%c0_16, %c0_17, %c0_18, %c0_19], %17 {strides = array<i32>} : memref<1x1x8x8xf32, #tpu.memory_space<vmem>>, vector<1x1x8x8xf32>,
    %c0_20 = arith.constant 0 : index
    %c0_21 = arith.constant 0 : index
    %c0_22 = arith.constant 0 : index
    %18 = vector.load %arg6[%c0_20, %c0_21, %c0_22] : memref<1x32x8xf32, #tpu.memory_space<vmem>>, vector<1x32x8xf32>
    %19 = vector.shape_cast %18 : vector<1x32x8xf32> to vector<32x8xf32>
    %cst_23 = arith.constant dense<0.000000e+00> : vector<8x8xf32>
    %20 = tpu.matmul %1, %19, %cst_23 {dimension_numbers = #tpu.dot_dimension_numbers<[1], [0], [0], [1], [0, 0, 1, 1], [], []>} : vector<8x32xf32>, vector<32x8xf32>, vector<8x8xf32> -> vector<8x8xf32>
    %c0_24 = arith.constant 0 : index
    %c0_25 = arith.constant 0 : index
    %c0_26 = arith.constant 0 : index
    %21 = vector.load %arg8[%c0_24, %c0_25, %c0_26] : memref<1x1x8xf32, #tpu.memory_space<vmem>>, vector<1x1x8xf32>
    %22 = vector.shape_cast %21 : vector<1x1x8xf32> to vector<1x8xf32>
    %23 = vector.broadcast %22 : vector<1x8xf32> to vector<8x8xf32>
    %24 = arith.addf %20, %23 : vector<8x8xf32>
    %c0_27 = arith.constant 0 : index
    %c0_28 = arith.constant 0 : index
    %c0_29 = arith.constant 0 : index
    %c0_30 = arith.constant 0 : index
    %25 = vector.load %arg11[%c0_27, %c0_28, %c0_29, %c0_30] : memref<1x1x8x8xf32, #tpu.memory_space<vmem>>, vector<1x1x8x8xf32>
    %26 = vector.shape_cast %25 : vector<1x1x8x8xf32> to vector<8x8xf32>
    %27 = vector.shape_cast %24 : vector<8x8xf32> to vector<1x1x8x8xf32>
    tpu.vector_store %arg11[%c0_27, %c0_28, %c0_29, %c0_30], %27 {strides = array<i32>} : memref<1x1x8x8xf32, #tpu.memory_space<vmem>>, vector<1x1x8x8xf32>,
    return
  }
  func.func @transform_0(%arg0: i32, %arg1: i32, %arg2: i32) -> (i32, i32, i32) {
    %c0_i32 = arith.constant 0 : i32
    %c0_i32_0 = arith.constant 0 : i32
    return %arg0, %arg1, %c0_i32 : i32, i32, i32
  }
  func.func @transform_1(%arg0: i32, %arg1: i32, %arg2: i32) -> (i32, i32, i32) {
    %c0_i32 = arith.constant 0 : i32
    %c0_i32_0 = arith.constant 0 : i32
    %c0_i32_1 = arith.constant 0 : i32
    return %arg2, %c0_i32, %c0_i32_0 : i32, i32, i32
  }
  func.func @transform_2(%arg0: i32, %arg1: i32, %arg2: i32) -> (i32, i32, i32) {
    %c0_i32 = arith.constant 0 : i32
    %c0_i32_0 = arith.constant 0 : i32
    %c0_i32_1 = arith.constant 0 : i32
    return %arg2, %c0_i32, %c0_i32_0 : i32, i32, i32
  }
  func.func @transform_3(%arg0: i32, %arg1: i32, %arg2: i32) -> (i32, i32, i32) {
    %c0_i32 = arith.constant 0 : i32
    %c0_i32_0 = arith.constant 0 : i32
    %c0_i32_1 = arith.constant 0 : i32
    return %arg2, %c0_i32, %c0_i32_0 : i32, i32, i32
  }
  func.func @transform_4(%arg0: i32, %arg1: i32, %arg2: i32) -> (i32, i32, i32) {
    %c0_i32 = arith.constant 0 : i32
    %c0_i32_0 = arith.constant 0 : i32
    %c0_i32_1 = arith.constant 0 : i32
    return %arg2, %c0_i32, %c0_i32_0 : i32, i32, i32
  }
  func.func @transform_5(%arg0: i32, %arg1: i32, %arg2: i32) -> (i32, i32, i32) {
    %c0_i32 = arith.constant 0 : i32
    %c0_i32_0 = arith.constant 0 : i32
    %c0_i32_1 = arith.constant 0 : i32
    return %arg2, %c0_i32, %c0_i32_0 : i32, i32, i32
  }
  func.func @transform_6(%arg0: i32, %arg1: i32, %arg2: i32) -> (i32, i32, i32, i32) {
    %c0_i32 = arith.constant 0 : i32
    %c0_i32_0 = arith.constant 0 : i32
    return %arg0, %arg2, %arg1, %c0_i32 : i32, i32, i32, i32
  }
  func.func @transform_7(%arg0: i32, %arg1: i32, %arg2: i32) -> (i32, i32, i32, i32) {
    %c0_i32 = arith.constant 0 : i32
    %c0_i32_0 = arith.constant 0 : i32
    return %arg0, %arg2, %arg1, %c0_i32 : i32, i32, i32, i32
  }
  func.func @transform_8(%arg0: i32, %arg1: i32, %arg2: i32) -> (i32, i32, i32, i32) {
    %c0_i32 = arith.constant 0 : i32
    %c0_i32_0 = arith.constant 0 : i32
    return %arg0, %arg2, %arg1, %c0_i32 : i32, i32, i32, i32
  }
}

</mosaic_0001>

<bundles_post_ra>
// kernel: tpu_custom_call.1
= control target key start
LH: loop header
LB: loop body
LE: loop exit
PB: predicated region body
PF: predicated region fallthrough
CT: control target
= control target key end

     0   :  { %s1591_s0 = inlined_call_operand.vmem [shape: f32[2,8,32], index: 0, kind: input, shape index: {}]   ;;  %s1592_s1 = inlined_call_operand.vmem [shape: f32[4,32,8], index: 1, kind: input, shape index: {}]   ;;  %s1593_s2 = inlined_call_operand.vmem [shape: f32[4,32,8], index: 2, kind: input, shape index: {}]   ;;  %s1594_s3 = inlined_call_operand.vmem [shape: f32[4,32,8], index: 3, kind: input, shape index: {}]   ;;  %s1595_s4 = inlined_call_operand.vmem [shape: f32[4,1,8], index: 4, kind: input, shape index: {}]   ;;  %s1596_s5 = inlined_call_operand.vmem [shape: f32[4,1,8], index: 5, kind: input, shape index: {}]   ;;  %s1597_s6 = inlined_call_operand.hbm [shape: f32[2,4,8,8], index: 6, kind: output, shape index: {0}]   ;;  %s1598_s7 = inlined_call_operand.hbm [shape: f32[2,4,8,8], index: 7, kind: output, shape index: {1}]   ;;  %s1599_s8 = inlined_call_operand.hbm [shape: f32[2,4,8,8], index: 8, kind: output, shape index: {2}]  }
   0x1   :  { %1607 = sst [smem:[#allocation13_spill]] %s1591_s0 }
   0x2   :  { %1608 = sst [smem:[#allocation14_spill]] %s1592_s1 }
   0x3   :  { %1609 = sst [smem:[#allocation15_spill]] %s1593_s2 }
   0x4   :  { %14 = vsyncpa [#allocation3], 0 }
   0x5   :  { %16 = vsyncpa [#allocation3 + $0x1], 0 }
   0x6   :  { %17 = vsyncpa [#allocation5], 0 }
   0x7   :  { %19 = vsyncpa [#allocation5 + $0x1], 0  ;;  %s1344_s27 = smov 0   ;;  %s1346_s28 = smov 0  }
   0x8   :  { %s1348_s29 = smov 0   ;;  %s1350_s30 = smov 0  }
   0x9   :  { %s1352_s9 = smov 0   ;;  %s1354_s10 = smov 0  }
   0xa   :  { %s1356_s11 = smov 0   ;;  %s1358_s12 = smov 0  }
   0xb LB: > { %1610 = sst [smem:[#allocation9_spill]] %s1283_s10  ;;  %s1601_s13 = sadd.s32 4294967295, %s1291_s12   ;;  %s1291_s12 = sphi %s1358_s12, %s25_s12   ;;  %s1287_s11 = sphi %s1356_s11, %s1625_s11   ;;  %s1283_s10 = sphi %s1354_s10, %s1624_s10   ;;  %s1279_s9 = sphi %s1352_s9, %s1623_s9   ;;  %s1275_s30 = sphi %s1350_s30, %s1622_s30   ;;  %s1271_s29 = sphi %s1348_s29, %s1628_s29   ;;  %s1267_s28 = sphi %s1346_s28, %s1627_s28   ;;  %s1263_s27 = sphi %s1344_s27, %s1626_s27  }
   0xc   : > { %1611 = sst [smem:[#allocation10_spill]] %s1287_s11  ;;  %s1600_s14 = sadd.s32 4294967294, %s1291_s12  }
   0xd   : > { %s37_s15 = sadd.s32 1, %s1283_s10  ;;  %s44_s16 = sadd.s32 1, %s1287_s11 }
   0xe   : > { %p38_p0 = scmp.ge.s32.totalorder %s37_s15, 4  ;;  %p223_p1 = scmp.ne.s32.totalorder %s1271_s29, %s1267_s28 }
   0xf   : > { %p224_p2 = scmp.eq.s32.totalorder %s1601_s13, 7  ;;  %p229_p5 = scmp.ne.s32.totalorder %s1267_s28, %s1263_s27 }
  0x10   : > { %s1630_s15 = smov (%p38_p0, %s37_s15), 0  ;;  %s1632_s16 = smov (!%p38_p0, %s44_s16), %s1287_s11 }
  0x11   : > { %1612 = sst [smem:[#allocation11_spill]] %s1630_s15  ;;  %s207_s17 = ssub.s32 %s1283_s10, %s1630_s15 }
  0x12   : > { %p1397_p3 = por %p224_p2, %p223_p1  ;;  %p46_p4 = scmp.ge.s32.totalorder %s1632_s16, 2 }
  0x13   : > { %p230_p6 = scmp.eq.s32.totalorder %s1600_s14, 7  ;;  %p957_p7 = scmp.ge.s32.totalorder %s1291_s12, 1 }
  0x14   : > { %s1634_s16 = smov (%p46_p4, %s1632_s16), 0  ;;  %p354_p9 = scmp.lt.s32.totalorder %s1291_s12, 9 }
  0x15   : > { %1614 = sst [smem:[#allocation12_spill]] %s1634_s16  ;;  %p1408_p8 = por %p230_p6, %p229_p5 }
  0x16   : > { %s206_s20 = ssub.s32 %s1287_s11, %s1634_s16  ;;  %s213_s21 = sadd.s32 1, %s1271_s29 }
  0x17   : > { %s208_s22 = sor.u32 %s207_s17, %s206_s20  ;;  %p355_p10 = pnand %p957_p7, %p354_p9 }
  0x18   : > { %p211_p11 = scmp.eq.s32.totalorder %s208_s22, 0  ;;  %p428_p12 = scmp.lt.s32.totalorder (!%p355_p10), %s1275_s30, 3  ;;  %v1293_v0 = vmov (!%p355_p10), 0.0|0.0   ;;  %vm1294_vm0 = vmmov (!%p355_p10), 0   ;;  %v1295_v1 = vmov (!%p355_p10), 0.0   ;;  %vm461_vm1 = vcmask (!%p355_p10), 261120  }
  0x19   : > { %358 = sbr.rel (%p355_p10) target bundleno = 322 (0x142), region = 44  ;;  %p421_p13 = scmp.lt.s32.totalorder (!%p355_p10), %s1279_s9, 1  ;;  %1035 = vmatprep.subr.bf16.mxu0 (!%p355_p10), %v1293_v0  ;;  %1010 = vmatprep.mubr.msk.f32.mxu0 (!%p355_p10), %vm1294_vm0, %v1295_v1  ;;  %vm535_vm2 = vcmask (!%p355_p10), 64512  }
  0x1a   : > { %s1417_s23 = scalar_select %p211_p11, %s1271_s29, %s213_s21  }
  0x1b   : > { %1041 = vmatprep.subr.bf16.mxu1 (!%p355_p10), %v1293_v0  ;;  %1021 = vmatprep.mubr.msk.f32.mxu1 (!%p355_p10), %vm1294_vm0, %v1295_v1  ;;  %s1616_s1 = sld [smem:[#allocation14_spill]] (!%p355_p10)  ;;  %s1617_s2 = sld [smem:[#allocation15_spill]] (!%p355_p10) }
  0x1c   : > { %s1618_s0 = sld [smem:[#allocation13_spill]] (!%p355_p10) }
  0x20   : > { %s1423_s24 = scalar_select %p428_p12, %s1275_s30, 3 }
  0x21   : > { %s422_s25 = scalar_select %p421_p13, %s1279_s9, 1 }
  0x22   : > { %s984_s26 = sshll.u32 %s1423_s24, 5 }
  0x23   : > { %s432_s21 = scalar_lea.vmem %s1616_s1, %s984_s26  ;;  %s437_s13 = scalar_lea.vmem %s1617_s2, %s984_s26 }
  0x24   : > { %v450_v2 = vld [vmem:[%s432_s21] sm:$0xff]  ;;  %v451_v3 = vld [vmem:[%s432_s21 + $0x8] sm:$0xff]  ;;  %v452_v4 = vld [vmem:[%s432_s21 + $0x10] sm:$0xff]  ;;  %s442_s11 = scalar_lea.vmem %s1594_s3, %s984_s26  ;;  %s961_s10 = sshll.u32 %s422_s25, 3 }
  0x25   : > { %v1036_v5 = vpack.c.bf16 %v451_v3, %v450_v2  ;;  %v453_v6 = vld [vmem:[%s432_s21 + $0x18] sm:$0xff]  ;;  %v537_v7 = vld [vmem:[%s437_s13] sm:$0xff]  ;;  %v538_v8 = vld [vmem:[%s437_s13 + $0x8] sm:$0xff]  ;;  %s427_s14 = scalar_lea.vmem %s1618_s0, %s961_s10  ;;  %s1606_s10 = sand.u32 1, %s1267_s28  }
  0x26   : > { %v1042_v9 = vpack.c.bf16 %v538_v8, %v537_v7  ;;  %v1039_v10 = vpack.c.bf16 %v453_v6, %v452_v4  ;;  %v539_v11 = vld [vmem:[%s437_s13 + $0x10] sm:$0xff]  ;;  %v540_v12 = vld [vmem:[%s437_s13 + $0x18] sm:$0xff]  ;;  %v612_v13 = vld [vmem:[%s442_s11] sm:$0xff]  ;;  %s976_s13 = sshll.u32 %s1279_s9, 2  ;;  %s1445_s15 = sshll.u32 %s1606_s10, 3 }
  0x27   : > { %1037 = vmatpush3.bf16.msra.mxu0 %v1036_v5  ;;  %v613_v14 = vld [vmem:[%s442_s11 + $0x8] sm:$0xff]  ;;  %v1045_v15 = vpack.c.bf16 %v540_v12, %v539_v11  ;;  %v449_v16 = vld [vmem:[%s427_s14] sm:$0xff]  ;;  %v614_v18 = vld [vmem:[%s442_s11 + $0x10] sm:$0xff]  ;;  %s717_s16 = sadd.s32 %s1275_s30, %s976_s13  ;;  %s1619_s21 = sadd.s32 4294967295, %s1291_s12  }
  0x28   : > { %1038 = vmatprep.subr.bf16.mxu0 %v1293_v0  ;;  %1043 = vmatpush3.bf16.msra.mxu1 %v1042_v9  ;;  %v1048_v17 = vpack.c.bf16 %v613_v14, %v612_v13  ;;  %v615_v19 = vld [vmem:[%s442_s11 + $0x18] sm:$0xff]  ;;  %s445_s11 = scalar_lea.vmem %s1595_s4, %s1423_s24  ;;  %s1454_s22 = sand.u32 1, %s1619_s21  }
  0x29   : > { %1044 = vmatprep.subr.bf16.mxu1 %v1293_v0  ;;  %v1051_v20 = vpack.c.bf16 %v615_v19, %v614_v18  ;;  %s1456_s17 = sshll.u32 %s717_s16, 7  ;;  %v968_v21 = vld [vmem:[%s445_s11] ss:$0 sm:$0xff]  ;;  %s413_s9 = scalar_lea.vmem [#allocation4], %s1445_s15 }
  0x2a   : > { %s737_s20 = sshll.u32 %s413_s9, 4  ;;  %s406_s14 = scalar_lea.vmem [#allocation2], %s1445_s15  ;;  %s1466_s20 = int_to_ptr.vmem [resolvable:$true] %s737_s20 }
  0x2b   : > { %1040 = vmatpush3.bf16.msra.mxu0 %v1039_v10  ;;  %s721_s10 = sshll.u32 %s406_s14, 4  ;;  %s1464_s25 = scalar_lea.hbm %s1598_s7, %s1456_s17  ;;  %s1474_s10 = int_to_ptr.vmem [resolvable:$true] %s721_s10 }
  0x2c   : > { %1047 = vmatprep.subr.bf16.mxu0 %v1293_v0  ;;  %1046 = vmatpush3.bf16.msra.mxu1 %v1045_v15  ;;  %s1472_s11 = scalar_lea.hbm %s1597_s6, %s1456_s17  ;;  %s448_s13 = scalar_lea.vmem %s1596_s5, %s1423_s24 }
  0x2d   : > { %s700_s0 = scalar_lea.sflag [#allocation5], %s1454_s22  ;;  %s1137_s1 = scalar_lea.vmem %s1466_s20, 128 }
  0x2e   : > { %1011 = vmatmul.mubr.msk.f32.vlgmr.msra.gmra.mrb[0].mxu0 %vm461_vm1, %v449_v16  ;;  %p1138_p0 = scmp.ne.s32.totalorder %s1466_s20, %s1137_s1  ;;  %s1296_s16 = smov [#allocation4]  }
  0x2f   : > { %1049 = vmatpush3.bf16.msra.mxu0 %v1048_v17  ;;  %1032 = vmatprep.mubr.msk.f32.mxu0 %vm1294_vm0, %v1295_v1  ;;  %s1141_s26 = sshll.u32 %s1296_s16, 4  ;;  %s1142_s26 = int_to_ptr.vmem [resolvable:$false] %s1141_s26 }
  0x30   : > { %1050 = vmatprep.subr.bf16.mxu0 %v1293_v0  ;;  %1022 = vmatmul.mubr.msk.f32.vlgmr.msra.gmra.mrb[0].mxu1 %vm461_vm1, %v449_v16  ;;  %p1139_p1 = pnand %p1138_p0, %p1397_p3  ;;  %s1143_s2 = scalar_lea.vmem %s1142_s26, 256 }
  0x31   : > { %p1144_p4 = scmp.lt.s32.totalorder %s1466_s20, %s1142_s26  ;;  %p1145_p5 = scmp.lt.s32.totalorder %s1143_s2, %s1137_s1 }
  0x32   : > { %p1140_p2 = pneg %p1139_p1 }
  0x33   : > { %1052 = vmatpush3.bf16.msra.mxu0 %v1051_v20  ;;  %p1146_p6 = por %p1145_p5, %p1144_p4 }
  0x35   : > { %p1147_p7 = pnand %p1146_p6, %p1140_p2 }
  0x36   : > { %1033 = vmatmul.mubr.msk.f32.vlgmr.msra.gmra.mrb[2].mxu0 %vm461_vm1, %v449_v16 }
 0x101   : > { %v531_v22 = vpop.f32.mrb[0].mxu0 }
 0x102   : > { %v532_v23 = vadd.f32 %v968_v21, %v531_v22  ;;  %v1012_v24 = vpop.f32.mrb[1].mxu0 }
 0x103   : > { %v607_v25 = vpop.f32.mrb[0].mxu1 }
 0x104   : > { %611 = vst.msk [vmem:[%s413_s9] sm:$0xff] %vm535_vm2, %v607_v25  ;;  %v1023_v26 = vpop.f32.mrb[1].mxu1  ;;  %536 = vst.msk [vmem:[%s406_s14] sm:$0xff] %vm535_vm2, %v532_v23 }
 0x105   : > { %1150 = shalt.err (!%p1147_p7)
}
 0x106   : > { %s1151_s9 = scalar_lea.hbm %s1464_s25, 128  ;;  %s1155_s30 = scalar_lea.hbm %s1598_s7, 1024 }
 0x107   : > { %p1152_p9 = scmp.ne.s32.totalorder %s1464_s25, %s1151_s9  ;;  %p1156_p12 = scmp.lt.u32.totalorder %s1464_s25, %s1598_s7 }
 0x108   : > { %p1157_p13 = scmp.lt.u32.totalorder %s1155_s30, %s1151_s9  ;;  %p1159_p1 = scmp.lt.u32.totalorder %s1151_s9, %s1464_s25 }
 0x109   : > { %p1153_p10 = pnand %p1152_p9, %p1397_p3 }
 0x10a   : > { %p1158_p0 = por %p1157_p13, %p1156_p12 }
 0x10b   : > { %p1154_p11 = pneg %p1153_p10 }
 0x10c   : > { %p1160_p2 = por %p1159_p1, %p1158_p0 }
 0x10e   : > { %p1161_p4 = pnand %p1160_p2, %p1154_p11 }
 0x110   : > { %1164 = shalt.err (!%p1161_p4)
}
 0x111   : > { %1054 = dma.vmem_to_hbm [thread:$0]  (%p1397_p3), %s1466_s20, 128, %s1464_s25, %s700_s0  }
 0x112   : > { %s1620_s1 = sand.u32 1, %s1267_s28   ;;  %s1165_s14 = scalar_lea.vmem %s1474_s10, 128 }
 0x113   : > { %s695_s2 = scalar_lea.sflag [#allocation3], %s1620_s1  ;;  %p1166_p5 = scmp.ne.s32.totalorder %s1474_s10, %s1165_s14 }
 0x114   : > { %s1297_s9 = smov [#allocation2]  }
 0x115   : > { %p1167_p6 = pnand %p1166_p5, %p1397_p3  ;;  %s1169_s21 = sshll.u32 %s1297_s9, 4  ;;  %s1170_s21 = int_to_ptr.vmem [resolvable:$false] %s1169_s21 }
 0x116   : > { %s1171_s30 = scalar_lea.vmem %s1170_s21, 256  ;;  %p1172_p9 = scmp.lt.s32.totalorder %s1474_s10, %s1170_s21 }
 0x117   : > { %p1168_p7 = pneg %p1167_p6  ;;  %p1173_p10 = scmp.lt.s32.totalorder %s1171_s30, %s1165_s14 }
 0x119   : > { %p1174_p11 = por %p1173_p10, %p1172_p9 }
 0x11b   : > { %p1175_p12 = pnand %p1174_p11, %p1168_p7 }
 0x11d   : > { %1178 = shalt.err (!%p1175_p12)
}
 0x11e   : > { %s1179_s20 = scalar_lea.hbm %s1472_s11, 128  ;;  %s1183_s26 = scalar_lea.hbm %s1597_s6, 1024 }
 0x11f   : > { %p1180_p13 = scmp.ne.s32.totalorder %s1472_s11, %s1179_s20  ;;  %p1184_p2 = scmp.lt.u32.totalorder %s1472_s11, %s1597_s6 }
 0x120   : > { %p1185_p4 = scmp.lt.u32.totalorder %s1183_s26, %s1179_s20  ;;  %p1187_p6 = scmp.lt.u32.totalorder %s1179_s20, %s1472_s11 }
 0x121   : > { %p1181_p0 = pnand %p1180_p13, %p1397_p3 }
 0x122   : > { %p1186_p5 = por %p1185_p4, %p1184_p2 }
 0x123   : > { %p1182_p1 = pneg %p1181_p0 }
 0x124   : > { %p1188_p7 = por %p1187_p6, %p1186_p5 }
 0x126   : > { %p1189_p9 = pnand %p1188_p7, %p1182_p1 }
 0x128   : > { %1192 = shalt.err (!%p1189_p9)
}
 0x129   : > { %1053 = dma.vmem_to_hbm [thread:$0]  (%p1397_p3), %s1474_s10, 128, %s1472_s11, %s695_s2   ;;  %v971_v27 = vld [vmem:[%s448_s13] ss:$0 sm:$0xff]  ;;  %v689_v28 = vpop.f32.mrb[2].mxu0 }
 0x12a   : > { %s420_s30 = scalar_lea.vmem [#allocation6], %s1445_s15  ;;  %v690_v29 = vadd.f32 %v971_v27, %v689_v28  ;;  %v1034_v30 = vpop.f32.mrb[3].mxu0  ;;  %s1539_s26 = scalar_lea.hbm %s1599_s8, %s1456_s17 }
 0x12b   : > { %s753_s25 = sshll.u32 %s420_s30, 4  ;;  %s1298_s24 = smov [#allocation6]   ;;  %s754_s25 = int_to_ptr.vmem [resolvable:$true] %s753_s25 }
 0x12c   : > { %693 = vst.msk [vmem:[%s420_s30] sm:$0xff] %vm535_vm2, %v690_v29  ;;  %s1193_s1 = scalar_lea.vmem %s754_s25, 128  ;;  %s1197_s10 = sshll.u32 %s1298_s24, 4  ;;  %s1198_s10 = int_to_ptr.vmem [resolvable:$false] %s1197_s10 }
 0x12d   : > { %p1194_p10 = scmp.ne.s32.totalorder %s754_s25, %s1193_s1  ;;  %s1199_s15 = scalar_lea.vmem %s1198_s10, 256 }
 0x12e   : > { %p1200_p13 = scmp.lt.s32.totalorder %s754_s25, %s1198_s10  ;;  %p1201_p0 = scmp.lt.s32.totalorder %s1199_s15, %s1193_s1 }
 0x12f   : > { %p1195_p11 = pnand %p1194_p10, %p1397_p3 }
 0x130   : > { %p1202_p1 = por %p1201_p0, %p1200_p13 }
 0x131   : > { %p1196_p12 = pneg %p1195_p11 }
 0x133   : > { %p1203_p2 = pnand %p1202_p1, %p1196_p12 }
 0x135   : > { %1206 = shalt.err (!%p1203_p2)
}
 0x136   : > { %s1207_s17 = scalar_lea.hbm %s1539_s26, 128  ;;  %s1211_s2 = scalar_lea.hbm %s1599_s8, 1024 }
 0x137   : > { %p1208_p4 = scmp.ne.s32.totalorder %s1539_s26, %s1207_s17  ;;  %p1212_p7 = scmp.lt.u32.totalorder %s1539_s26, %s1599_s8 }
 0x138   : > { %p1213_p9 = scmp.lt.u32.totalorder %s1211_s2, %s1207_s17  ;;  %p1215_p11 = scmp.lt.u32.totalorder %s1207_s17, %s1539_s26 }
 0x139   : > { %p1209_p5 = pnand %p1208_p4, %p1397_p3 }
 0x13a   : > { %p1214_p10 = por %p1213_p9, %p1212_p7 }
 0x13b   : > { %p1210_p6 = pneg %p1209_p5 }
 0x13c   : > { %p1216_p12 = por %p1215_p11, %p1214_p10 }
 0x13e   : > { %p1217_p13 = pnand %p1216_p12, %p1210_p6 }
 0x140   : > { %1220 = shalt.err (!%p1217_p13)
}
 0x141   : > { %1055 = dma.vmem_to_hbm [thread:$0]  (%p1397_p3), %s754_s25, 128, %s1539_s26, %s700_s0  }
 0x142 PF: > { %p1069_p0 = scmp.ge.s32.totalorder %s1291_s12, 2  ;;  %s765_s21 = sand.u32 1, %s1263_s27  }
 0x143   : > { %s766_s30 = scalar_lea.sflag [#allocation3], %s765_s21 }
 0x144   : > { %p1060_p1 = pnand %p1069_p0, %p1408_p8 }
 0x146   : > { %1254 = dma.done.wait (!%p1060_p1), %s766_s30, 128  }
 0x147   : > { %1256 = vsyncadd (!%p1060_p1), %s766_s30, 4294967168  ;;  %s1621_s20 = sadd.s32 4294967294, %s1291_s12  }
 0x148   : > { %s774_s16 = sand.u32 1, %s1621_s20  }
 0x149   : > { %s775_s1 = scalar_lea.sflag [#allocation5], %s774_s16 }
 0x14a   : > { %1258 = dma.done.wait (!%p1060_p1), %s775_s1, 256  }
 0x14b   : > { %1260 = vsyncadd (!%p1060_p1), %s775_s1, 4294967040  ;;  %s25_s12 = sadd.s32 1, %s1291_s12   ;;  %s1622_s30 = sld [smem:[#allocation9_spill]] }
 0x14c   : > { %p22_p3 = scmp.ge.s32.totalorder %s25_s12, 10   ;;  %s1623_s9 = sld [smem:[#allocation10_spill]] }
 0x14d   : > { %s1624_s10 = sld [smem:[#allocation11_spill]]  ;;  %s1625_s11 = sld [smem:[#allocation12_spill]] }
 0x14e   : > { %s1626_s27 = smov %s1267_s28  ;;  %s1627_s28 = smov %s1271_s29 }
 0x14f   : > { %s1628_s29 = smov %s1417_s23  ;;  %24 = sbr.rel (!%p22_p3) target bundleno = 11 (0xb), region = 126 }
 0x156   :  { %789 = vsyncpa [#allocation3], 1 }
 0x157   :  { %791 = vsyncpa [#allocation3 + $0x1], 1 }
 0x158   :  { %792 = vsyncpa [#allocation5], 1 }
 0x159   :  { %794 = vsyncpa [#allocation5 + $0x1], 1 }

</bundles_post_ra>
